<compile_context>
chip_gen: v7x
topology: tpu7x:2x2x1
jax: 0.10.0
libtpu: 0.0.40
codegen_flags: <defaults>
</compile_context>

<pallas_src>
import jax
import jax.numpy as jnp
from jax import lax
from jax.experimental import pallas as pl
from jax.experimental.pallas import tpu as pltpu


_USE_BF16_MATMUL = False  # gate: exceeds the 1e-4 check if enabled


# ---------------------------------------------------------------------------
# Kernel
# ---------------------------------------------------------------------------
def _resblock_kernel(x_ref, m0_ref, b0_ref, m1_ref, b1_ref, out_ref):
    """One batch block per grid step.

    x_ref  : (bb, H, L)   original input (pre-relu), lane-packed layout
    m0_ref : (L, 3*L)     conv0 fused band matrices (one output slab per kh)
    b0_ref : (1, L)       conv0 bias, tiled over W and packed batch slots
    m1_ref : (L, 3*L)     conv1 fused band matrices
    b1_ref : (1, L)       conv1 bias
    out_ref: (bb, H, L)
    """
    bb, H, L = out_ref.shape
    M = bb * H

    # Per-row image-height index.  Rows with h==0 / h==H-1 are exactly the
    # rows whose shifted-neighbour contribution is conv zero padding; the
    # same mask kills roll wrap-around and cross-image leakage of the flat
    # sublane roll below.
    h_idx = lax.broadcasted_iota(jnp.int32, (bb, H, L), 1).reshape(M, L)
    has_above = h_idx >= 1          # input row h-1 exists
    has_below = h_idx <= H - 2      # input row h+1 exists

    def conv3x3(xf, m_ref, b_ref):
        # xf: (M, L).  One wide matmul; the three kh taps come out as three
        # adjacent L-wide output slabs.
        if _USE_BF16_MATMUL:
            p = jnp.dot(xf.astype(jnp.bfloat16),
                        m_ref[...].astype(jnp.bfloat16),
                        preferred_element_type=jnp.float32)
        else:
            p = jnp.dot(xf, m_ref[...], preferred_element_type=jnp.float32)
        p0 = p[:, :L]           # kh=0 tap: needs input row h-1
        p1 = p[:, L:2 * L]      # kh=1 tap: input row h
        p2 = p[:, 2 * L:]       # kh=2 tap: input row h+1
        # Sublane rotations route to the XLU (no shifted VMEM copies).
        up = pltpu.roll(p0, shift=1, axis=0)        # row h <- p0[h-1]
        dn = pltpu.roll(p2, shift=M - 1, axis=0)    # row h <- p2[h+1]
        y = p1 + jnp.where(has_above, up, 0.0) + jnp.where(has_below, dn, 0.0)
        return y + b_ref[...]                        # (M, L)

    x = x_ref[...].astype(jnp.float32).reshape(M, L)   # pre-relu input rows
    xr = jnp.maximum(x, 0.0)                            # relu(x)
    h = jnp.maximum(conv3x3(xr, m0_ref, b0_ref), 0.0)   # relu(conv0)
    y = conv3x3(h, m1_ref, b1_ref)                      # conv1
    out_ref[...] = (y + x).reshape(bb, H, L).astype(out_ref.dtype)


# ---------------------------------------------------------------------------
# Wrapper helpers
# ---------------------------------------------------------------------------
def _band_matrices(w, C, W):
    """(C_out, C_in, 3, 3) torch conv weight -> (3, W*C, W*C) band matrices.

    M[kh, w_in*C + ci, w_out*C + co] = w[co, ci, kh, w_in - w_out + 1],
    zero when the kw tap falls outside the kernel (=> W-boundary padding).
    """
    wk = jnp.transpose(w, (2, 3, 1, 0)).astype(jnp.float32)      # (kh,kw,ci,co)
    WC = W * C
    j = jnp.arange(WC)
    w_idx, c_idx = j // C, j % C
    kw = w_idx[:, None] - w_idx[None, :] + 1                     # (WC, WC)
    valid = (kw >= 0) & (kw <= 2)
    m = wk[:, jnp.clip(kw, 0, 2), c_idx[:, None], c_idx[None, :]]
    return jnp.where(valid[None], m, 0.0)                        # (3, WC, WC)


def _packed_fused_band(w, C, W, pack):
    """Block-diagonal lane packing (keeps packed batch elems independent) and
    fuse the three kh taps along the output axis -> (L, 3*L)."""
    m = _band_matrices(w, C, W)                                  # (3, WC, WC)
    WC = W * C
    L = pack * WC
    if pack > 1:
        eye = jnp.eye(pack, dtype=jnp.float32)
        m = jnp.einsum("pq,kab->kpaqb", eye, m).reshape(3, L, L)
    return jnp.concatenate([m[0], m[1], m[2]], axis=1)           # (L, 3L)


def prepare_resblock_params(w0, b0, w1, b1, W, pack):
    """Precompute grid-invariant kernel inputs once (inference weights)."""
    C = w0.shape[0]
    L = pack * W * C
    m0 = _packed_fused_band(w0, C, W, pack)
    m1 = _packed_fused_band(w1, C, W, pack)
    b0r = jnp.tile(b0.astype(jnp.float32), W * pack).reshape(1, L)
    b1r = jnp.tile(b1.astype(jnp.float32), W * pack).reshape(1, L)
    return m0, b0r, m1, b1r


def _lane_pack_factor(WC, N):
    """How many batch elements to pack onto the 128-wide lane axis."""
    if WC < 128 and 128 % WC == 0:
        return max(1, min(128 // WC, max(N, 1)))
    return 1


def _num_tensorcores():
    try:
        n = getattr(jax.local_devices()[0], "num_cores", 1)
        return max(1, int(n)) if n else 1
    except Exception:
        return 1


def _pick_block_pairs(Np, H, L, itemsize=4):
    """Largest batch block (in packed pairs) that divides Np, keeps >=2 grid
    steps per TensorCore on multi-core parts, and whose pipeline buffers plus
    live f32 intermediates stay inside a budget that is safe even on v7x's
    64 MiB VMEM."""
    cores = _num_tensorcores()
    min_grid = max(1, min(2 * cores, Np)) if cores > 1 else 1
    budget = 20 << 20        # bytes available for block-sized live data
    live_blocks = 14         # 2x2 pipeline buffers (in/out) + ~10 f32 temps
    best = 1
    for bb in range(1, Np + 1):
        if Np % bb:
            continue
        if Np // bb < min_grid:
            continue
        if live_blocks * bb * H * L * itemsize > budget:
            continue
        best = bb
    return best


# ---------------------------------------------------------------------------
# Forward pass
# ---------------------------------------------------------------------------
@jax.jit
def residual_block_apply(x_nchw, m0, b0r, m1, b1r):
    """x_nchw: (N, C, H, W) float32 (PyTorch layout); m*/b* from
    prepare_resblock_params."""
    N, C, H, W = x_nchw.shape
    WC = W * C
    L = m0.shape[0]
    pack = L // WC
    assert L == pack * WC and m0.shape[1] == 3 * L

    # Layout glue: NCHW -> (N, H, W*C) rows, then pack `pack` batch elements
    # onto the lane axis -> (Np, H, L).
    x_rows = jnp.transpose(x_nchw, (0, 2, 3, 1)).reshape(N, H, WC)
    pad = (-N) % pack
    if pad:
        x_rows = jnp.concatenate(
            [x_rows, jnp.zeros((pad, H, WC), x_rows.dtype)], axis=0)
    Nt = N + pad
    Np = Nt // pack
    xp = (x_rows.reshape(Np, pack, H, WC)
                .transpose(0, 2, 1, 3)
                .reshape(Np, H, L))

    bb = _pick_block_pairs(Np, H, L)
    grid = (Np // bb,)

    out = pl.pallas_call(
        _resblock_kernel,
        out_shape=jax.ShapeDtypeStruct((Np, H, L), x_nchw.dtype),
        grid_spec=pltpu.PrefetchScalarGridSpec(
            num_scalar_prefetch=0,
            grid=grid,
            in_specs=[
                pl.BlockSpec((bb, H, L), lambda n: (n, 0, 0)),
                pl.BlockSpec((L, 3 * L), lambda n: (0, 0)),
                pl.BlockSpec((1, L), lambda n: (0, 0)),
                pl.BlockSpec((L, 3 * L), lambda n: (0, 0)),
                pl.BlockSpec((1, L), lambda n: (0, 0)),
            ],
            out_specs=pl.BlockSpec((bb, H, L), lambda n: (n, 0, 0)),
        ),
        compiler_params=pltpu.CompilerParams(
            dimension_semantics=("parallel",),
            vmem_limit_bytes=32 * 1024 * 1024,
        ),
    )(xp, m0, b0r, m1, b1r)

    # Unpack lanes and return to PyTorch NCHW.
    out_rows = (out.reshape(Np, H, pack, WC)
                   .transpose(0, 2, 1, 3)
                   .reshape(Nt, H, WC))[:N]
    return jnp.transpose(out_rows.reshape(N, H, W, C), (0, 3, 1, 2))


# ---------------------------------------------------------------------------
# Pure-JAX reference (matches PyTorch Conv2d(3x3, padding=1) semantics)
# ---------------------------------------------------------------------------
def _reference(x_nchw, w0, b0, w1, b1):
    def conv(x_nhwc, w, b):
        w_hwio = jnp.transpose(w, (2, 3, 1, 0))
        y = lax.conv_general_dilated(
            x_nhwc, w_hwio, window_strides=(1, 1), padding="SAME",
            dimension_numbers=("NHWC", "HWIO", "NHWC"))
        return y + b
    x = jnp.transpose(x_nchw, (0, 2, 3, 1))
    h = conv(jax.nn.relu(x), w0, b0)
    y = conv(jax.nn.relu(h), w1, b1)
    return jnp.transpose(y + x, (0, 3, 1, 2))


if __name__ == "__main__":
    N, C, H, W = 2, 4, 16, 16   # small shapes consistent with the module
    key = jax.random.PRNGKey(0)
    kx, k0w, k0b, k1w, k1b = jax.random.split(key, 5)

    x = jax.random.normal(kx, (N, C, H, W), dtype=jnp.float32)

    # deterministic param init (PyTorch-style uniform(-1/sqrt(fan_in), +...))
    fan_in = C * 3 * 3
    bound = 1.0 / (fan_in ** 0.5)
    w0 = jax.random.uniform(k0w, (C, C, 3, 3), jnp.float32, -bound, bound)
    b0 = jax.random.uniform(k0b, (C,), jnp.float32, -bound, bound)
    w1 = jax.random.uniform(k1w, (C, C, 3, 3), jnp.float32, -bound, bound)
    b1 = jax.random.uniform(k1b, (C,), jnp.float32, -bound, bound)

    # Band matrices / biases are built once, outside the per-call jit.
    pack = _lane_pack_factor(W * C, N)
    params = prepare_resblock_params(w0, b0, w1, b1, W, pack)

    out = residual_block_apply(x, *params)
    jax.block_until_ready(out)

    ref = _reference(x, w0, b0, w1, b1)
    assert out.shape == (N, C, H, W)
    assert jnp.allclose(out, ref, atol=1e-4, rtol=1e-4), "mismatch vs reference"

    print("KERNEL_OK")
</pallas_src>

<mosaic_0001>
module attributes {stable_mosaic.version = 11 : i64} {
  func.func @_resblock_kernel(%arg0: i32, %arg1: memref<1x16x128xf32, #tpu.memory_space<vmem>>, %arg2: memref<128x384xf32, #tpu.memory_space<vmem>>, %arg3: memref<1x128xf32, #tpu.memory_space<vmem>>, %arg4: memref<128x384xf32, #tpu.memory_space<vmem>>, %arg5: memref<1x128xf32, #tpu.memory_space<vmem>>, %arg6: memref<1x16x128xf32, #tpu.memory_space<vmem>>) attributes {dimension_semantics = [#tpu.dimension_semantics<parallel>], iteration_bounds = array<i64: 1>, scalar_prefetch = 0 : i64, scratch_operands = 0 : i64, tpu.core_type = #tpu.core_type<tc>, window_params = [{transform_indices = @transform_0, window_bounds = array<i64: 1, 16, 128>}, {pipeline_mode = #tpu.pipeline_mode<synchronous>, transform_indices = @transform_1, window_bounds = array<i64: 128, 384>}, {pipeline_mode = #tpu.pipeline_mode<synchronous>, transform_indices = @transform_2, window_bounds = array<i64: 1, 128>}, {pipeline_mode = #tpu.pipeline_mode<synchronous>, transform_indices = @transform_3, window_bounds = array<i64: 128, 384>}, {pipeline_mode = #tpu.pipeline_mode<synchronous>, transform_indices = @transform_4, window_bounds = array<i64: 1, 128>}, {transform_indices = @transform_5, window_bounds = array<i64: 1, 16, 128>}]} {
    %0 = tpu.iota {dimensions = array<i32: 1>} : vector<1x16x128xi32>
    %1 = vector.shape_cast %0 : vector<1x16x128xi32> to vector<16x128xi32>
    %c1_i32 = arith.constant 1 : i32
    %2 = vector.broadcast %c1_i32 : i32 to vector<16x128xi32>
    %3 = arith.cmpi sge, %1, %2 : vector<16x128xi32>
    %c14_i32 = arith.constant 14 : i32
    %4 = vector.broadcast %c14_i32 : i32 to vector<16x128xi32>
    %5 = arith.cmpi sle, %1, %4 : vector<16x128xi32>
    %c0 = arith.constant 0 : index
    %c0_0 = arith.constant 0 : index
    %c0_1 = arith.constant 0 : index
    %6 = vector.load %arg1[%c0, %c0_0, %c0_1] : memref<1x16x128xf32, #tpu.memory_space<vmem>>, vector<1x16x128xf32>
    %7 = vector.shape_cast %6 : vector<1x16x128xf32> to vector<16x128xf32>
    %cst = arith.constant 0.000000e+00 : f32
    %8 = vector.broadcast %cst : f32 to vector<16x128xf32>
    %9 = arith.maximumf %7, %8 : vector<16x128xf32>
    %c0_2 = arith.constant 0 : index
    %c0_3 = arith.constant 0 : index
    %10 = vector.load %arg2[%c0_2, %c0_3] : memref<128x384xf32, #tpu.memory_space<vmem>>, vector<128x384xf32>
    %cst_4 = arith.constant dense<0.000000e+00> : vector<16x384xf32>
    %11 = tpu.matmul %9, %10, %cst_4 {dimension_numbers = #tpu.dot_dimension_numbers<[1], [0], [0], [1], [0, 0, 1, 1], [], []>} : vector<16x128xf32>, vector<128x384xf32>, vector<16x384xf32> -> vector<16x384xf32>
    %12 = vector.extract_strided_slice %11 {offsets = [0, 0], sizes = [16, 128], strides = [1, 1]} : vector<16x384xf32> to vector<16x128xf32>
    %13 = vector.extract_strided_slice %11 {offsets = [0, 128], sizes = [16, 128], strides = [1, 1]} : vector<16x384xf32> to vector<16x128xf32>
    %14 = vector.extract_strided_slice %11 {offsets = [0, 256], sizes = [16, 128], strides = [1, 1]} : vector<16x384xf32> to vector<16x128xf32>
    %c1_i32_5 = arith.constant 1 : i32
    %15 = tpu.dynamic_rotate %12 by %c1_i32_5 dim 0 : vector<16x128xf32>, i32 -> vector<16x128xf32>
    %c15_i32 = arith.constant 15 : i32
    %16 = tpu.dynamic_rotate %14 by %c15_i32 dim 0 : vector<16x128xf32>, i32 -> vector<16x128xf32>
    %cst_6 = arith.constant 0.000000e+00 : f32
    %17 = vector.broadcast %cst_6 : f32 to vector<16x128xf32>
    %18 = arith.select %3, %15, %17 : vector<16x128xi1>, vector<16x128xf32>
    %19 = arith.addf %13, %18 : vector<16x128xf32>
    %cst_7 = arith.constant 0.000000e+00 : f32
    %20 = vector.broadcast %cst_7 : f32 to vector<16x128xf32>
    %21 = arith.select %5, %16, %20 : vector<16x128xi1>, vector<16x128xf32>
    %22 = arith.addf %19, %21 : vector<16x128xf32>
    %c0_8 = arith.constant 0 : index
    %c0_9 = arith.constant 0 : index
    %23 = vector.load %arg3[%c0_8, %c0_9] : memref<1x128xf32, #tpu.memory_space<vmem>>, vector<1x128xf32>
    %24 = vector.broadcast %23 : vector<1x128xf32> to vector<16x128xf32>
    %25 = arith.addf %22, %24 : vector<16x128xf32>
    %cst_10 = arith.constant 0.000000e+00 : f32
    %26 = vector.broadcast %cst_10 : f32 to vector<16x128xf32>
    %27 = arith.maximumf %25, %26 : vector<16x128xf32>
    %c0_11 = arith.constant 0 : index
    %c0_12 = arith.constant 0 : index
    %28 = vector.load %arg4[%c0_11, %c0_12] : memref<128x384xf32, #tpu.memory_space<vmem>>, vector<128x384xf32>
    %cst_13 = arith.constant dense<0.000000e+00> : vector<16x384xf32>
    %29 = tpu.matmul %27, %28, %cst_13 {dimension_numbers = #tpu.dot_dimension_numbers<[1], [0], [0], [1], [0, 0, 1, 1], [], []>} : vector<16x128xf32>, vector<128x384xf32>, vector<16x384xf32> -> vector<16x384xf32>
    %30 = vector.extract_strided_slice %29 {offsets = [0, 0], sizes = [16, 128], strides = [1, 1]} : vector<16x384xf32> to vector<16x128xf32>
    %31 = vector.extract_strided_slice %29 {offsets = [0, 128], sizes = [16, 128], strides = [1, 1]} : vector<16x384xf32> to vector<16x128xf32>
    %32 = vector.extract_strided_slice %29 {offsets = [0, 256], sizes = [16, 128], strides = [1, 1]} : vector<16x384xf32> to vector<16x128xf32>
    %c1_i32_14 = arith.constant 1 : i32
    %33 = tpu.dynamic_rotate %30 by %c1_i32_14 dim 0 : vector<16x128xf32>, i32 -> vector<16x128xf32>
    %c15_i32_15 = arith.constant 15 : i32
    %34 = tpu.dynamic_rotate %32 by %c15_i32_15 dim 0 : vector<16x128xf32>, i32 -> vector<16x128xf32>
    %cst_16 = arith.constant 0.000000e+00 : f32
    %35 = vector.broadcast %cst_16 : f32 to vector<16x128xf32>
    %36 = arith.select %3, %33, %35 : vector<16x128xi1>, vector<16x128xf32>
    %37 = arith.addf %31, %36 : vector<16x128xf32>
    %cst_17 = arith.constant 0.000000e+00 : f32
    %38 = vector.broadcast %cst_17 : f32 to vector<16x128xf32>
    %39 = arith.select %5, %34, %38 : vector<16x128xi1>, vector<16x128xf32>
    %40 = arith.addf %37, %39 : vector<16x128xf32>
    %c0_18 = arith.constant 0 : index
    %c0_19 = arith.constant 0 : index
    %41 = vector.load %arg5[%c0_18, %c0_19] : memref<1x128xf32, #tpu.memory_space<vmem>>, vector<1x128xf32>
    %42 = vector.broadcast %41 : vector<1x128xf32> to vector<16x128xf32>
    %43 = arith.addf %40, %42 : vector<16x128xf32>
    %44 = arith.addf %43, %7 : vector<16x128xf32>
    %45 = vector.shape_cast %44 : vector<16x128xf32> to vector<1x16x128xf32>
    %c0_20 = arith.constant 0 : index
    %c0_21 = arith.constant 0 : index
    %c0_22 = arith.constant 0 : index
    %46 = vector.load %arg6[%c0_20, %c0_21, %c0_22] : memref<1x16x128xf32, #tpu.memory_space<vmem>>, vector<1x16x128xf32>
    tpu.vector_store %arg6[%c0_20, %c0_21, %c0_22], %45 {strides = array<i32>} : memref<1x16x128xf32, #tpu.memory_space<vmem>>, vector<1x16x128xf32>,
    return
  }
  func.func @transform_0(%arg0: i32) -> (i32, i32, i32) {
    %c0_i32 = arith.constant 0 : i32
    %c0_i32_0 = arith.constant 0 : i32
    %c0_i32_1 = arith.constant 0 : i32
    return %arg0, %c0_i32, %c0_i32_0 : i32, i32, i32
  }
  func.func @transform_1(%arg0: i32) -> (i32, i32) {
    %c0_i32 = arith.constant 0 : i32
    %c0_i32_0 = arith.constant 0 : i32
    %c0_i32_1 = arith.constant 0 : i32
    return %c0_i32, %c0_i32_0 : i32, i32
  }
  func.func @transform_2(%arg0: i32) -> (i32, i32) {
    %c0_i32 = arith.constant 0 : i32
    %c0_i32_0 = arith.constant 0 : i32
    %c0_i32_1 = arith.constant 0 : i32
    return %c0_i32, %c0_i32_0 : i32, i32
  }
  func.func @transform_3(%arg0: i32) -> (i32, i32) {
    %c0_i32 = arith.constant 0 : i32
    %c0_i32_0 = arith.constant 0 : i32
    %c0_i32_1 = arith.constant 0 : i32
    return %c0_i32, %c0_i32_0 : i32, i32
  }
  func.func @transform_4(%arg0: i32) -> (i32, i32) {
    %c0_i32 = arith.constant 0 : i32
    %c0_i32_0 = arith.constant 0 : i32
    %c0_i32_1 = arith.constant 0 : i32
    return %c0_i32, %c0_i32_0 : i32, i32
  }
  func.func @transform_5(%arg0: i32) -> (i32, i32, i32) {
    %c0_i32 = arith.constant 0 : i32
    %c0_i32_0 = arith.constant 0 : i32
    %c0_i32_1 = arith.constant 0 : i32
    return %arg0, %c0_i32, %c0_i32_0 : i32, i32, i32
  }
}

</mosaic_0001>

<bundles_post_ra>
// kernel: residual_block_apply.1
= control target key start
LH: loop header
LB: loop body
LE: loop exit
PB: predicated region body
PF: predicated region fallthrough
CT: control target
= control target key end

     0   :  { %10 = vsyncpa [#allocation3], 0  ;;  %s772_s18 = smov [#allocation2]   ;;  %s1004_s0 = inlined_call_operand.vmem [shape: f32[1,16,128], index: 0, kind: input, shape index: {}]   ;;  %s1005_s1 = inlined_call_operand.vmem [shape: f32[128,384], index: 1, kind: input, shape index: {}]   ;;  %s1006_s2 = inlined_call_operand.vmem [shape: f32[1,128], index: 2, kind: input, shape index: {}]   ;;  %s1007_s3 = inlined_call_operand.hbm [shape: f32[128,384], index: 3, kind: input, shape index: {}]   ;;  %s1008_s4 = inlined_call_operand.vmem [shape: f32[1,128], index: 4, kind: input, shape index: {}]   ;;  %s1009_s5 = inlined_call_operand.vmem [shape: f32[1,16,128], index: 5, kind: output, shape index: {}]  }
   0x1   :  { %s22_s19 = sshll.u32 %s772_s18, 4  ;;  %s748_s22 = scalar_lea.hbm %s1007_s3, 6144  ;;  %s23_s19 = int_to_ptr.vmem [resolvable:$true] %s22_s19 }
   0x2   :  { %p749_p0 = scmp.ne.s32.totalorder %s1007_s3, %s748_s22  ;;  %p752_p1 = scmp.lt.u32.totalorder %s748_s22, %s1007_s3 }
   0x4   :  { %p754_p2 = pnand %p752_p1, %p749_p0 }
   0x6   :  { %757 = shalt.err (!%p754_p2)
}
   0x7   :  { %s758_s27 = scalar_lea.vmem %s23_s19, 6144  ;;  %p763_p4 = scmp.lt.s32.totalorder %s23_s19, %s23_s19 }
   0x8   :  { %p759_p3 = scmp.ne.s32.totalorder %s23_s19, %s758_s27  ;;  %p764_p5 = scmp.lt.s32.totalorder %s758_s27, %s758_s27 }
   0xa   :  { %p765_p6 = por %p764_p5, %p763_p4 }
   0xc   :  { %p766_p7 = pnand %p765_p6, %p759_p3 }
   0xe   :  { %769 = shalt.err (!%p766_p7)
}
   0xf   :  { %s773_s28 = smov 384   ;;  %s774_s29 = smov 24  }
  0x10   :  { %28 = dma.hbm_to_vmem [thread:$0]  %s1007_s3, 6144, %s23_s19, [#allocation3], %s773_s28, %s773_s28, %s774_s29  }
  0x11   :  { %770 = dma.done.wait [#allocation3], 6144  }
  0x12   :  { %771 = vsyncadd [#allocation3], 4294961152  ;;  %v775_v0 = vmov 0.0   ;;  %v46_v1 = vld [vmem:[%s1005_s1 + $0x8] sm:$0xff]  ;;  %v49_v2 = vld [vmem:[%s1005_s1 + $0x20] sm:$0xff] }
  0x13   :  { %157 = vmatprep.mubr.f32.mxu0 %v775_v0  ;;  %v45_v3 = vld [vmem:[%s1005_s1] sm:$0xff]  ;;  %v616_v4 = vpack.c.bf16 %v49_v2, %v46_v1  ;;  %v48_v5 = vld [vmem:[%s1005_s1 + $0x18] sm:$0xff]  ;;  %v55_v7 = vld [vmem:[%s1005_s1 + $0x50] sm:$0xff] }
  0x14   :  { %v52_v6 = vld [vmem:[%s1005_s1 + $0x38] sm:$0xff]  ;;  %v618_v8 = vpack.c.bf16 %v48_v5, %v45_v3  ;;  %v47_v10 = vld [vmem:[%s1005_s1 + $0x10] sm:$0xff]  ;;  %v50_v11 = vld [vmem:[%s1005_s1 + $0x28] sm:$0xff] }
  0x15   :  { %v620_v9 = vpack.c.bf16 %v55_v7, %v52_v6  ;;  %v51_v12 = vld [vmem:[%s1005_s1 + $0x30] sm:$0xff]  ;;  %617 = vmatprep.subr.bf16.mxu0 %v616_v4  ;;  %v648_v13 = vpack.c.bf16 %v50_v11, %v47_v10  ;;  %v54_v14 = vld [vmem:[%s1005_s1 + $0x48] sm:$0xff]  ;;  %v61_v16 = vld [vmem:[%s1005_s1 + $0x80] sm:$0xff] }
  0x16   :  { %v58_v15 = vld [vmem:[%s1005_s1 + $0x68] sm:$0xff]  ;;  %619 = vmatpush1.bf16.msra.mxu0 %v618_v8  ;;  %v622_v17 = vpack.c.bf16 %v54_v14, %v51_v12  ;;  %v53_v18 = vld [vmem:[%s1005_s1 + $0x40] sm:$0xff]  ;;  %v56_v19 = vld [vmem:[%s1005_s1 + $0x58] sm:$0xff] }
  0x17   :  { %621 = vmatprep.subr.bf16.mxu0 %v620_v9  ;;  %649 = vmatprep.subr.bf16.mxu1 %v648_v13  ;;  %v624_v20 = vpack.c.bf16 %v61_v16, %v58_v15  ;;  %v652_v21 = vpack.c.bf16 %v56_v19, %v53_v18  ;;  %v57_v22 = vld [vmem:[%s1005_s1 + $0x60] sm:$0xff]  ;;  %v60_v23 = vld [vmem:[%s1005_s1 + $0x78] sm:$0xff]  ;;  %v67_v25 = vld [vmem:[%s1005_s1 + $0xb0] sm:$0xff] }
  0x18   :  { %v64_v24 = vld [vmem:[%s1005_s1 + $0x98] sm:$0xff]  ;;  %651 = vmatpush3.bf16.msra.mxu1 %v648_v13  ;;  %v59_v26 = vld [vmem:[%s1005_s1 + $0x70] sm:$0xff]  ;;  %v62_v27 = vld [vmem:[%s1005_s1 + $0x88] sm:$0xff]  ;;  %v626_v29 = vpack.c.bf16 %v60_v23, %v57_v22 }
  0x19   :  { %653 = vmatprep.subr.bf16.mxu1 %v652_v21  ;;  %v656_v28 = vpack.c.bf16 %v62_v27, %v59_v26  ;;  %v65_v30 = vld [vmem:[%s1005_s1 + $0xa0] sm:$0xff]  ;;  %v68_v31 = vld [vmem:[%s1005_s1 + $0xb8] sm:$0xff]  ;;  %v628_v32 = vpack.c.bf16 %v67_v25, %v64_v24  ;;  %v63_v33 = vld [vmem:[%s1005_s1 + $0x90] sm:$0xff] }
  0x1a   :  { %623 = vmatpush1.bf16.msra.mxu0 %v622_v17  ;;  %v66_v34 = vld [vmem:[%s1005_s1 + $0xa8] sm:$0xff]  ;;  %v73_v36 = vld [vmem:[%s1005_s1 + $0xe0] sm:$0xff]  ;;  %v660_v37 = vpack.c.bf16 %v68_v31, %v65_v30  ;;  %v71_v39 = vld [vmem:[%s1005_s1 + $0xd0] sm:$0xff] }
  0x1b   :  { %625 = vmatprep.subr.bf16.mxu0 %v624_v20  ;;  %v70_v35 = vld [vmem:[%s1005_s1 + $0xc8] sm:$0xff]  ;;  %v630_v38 = vpack.c.bf16 %v66_v34, %v63_v33  ;;  %v69_v42 = vld [vmem:[%s1005_s1 + $0xc0] sm:$0xff]  ;;  %v72_v43 = vld [vmem:[%s1005_s1 + $0xd8] sm:$0xff] }
  0x1c   :  { %655 = vmatpush3.bf16.msra.mxu1 %v652_v21  ;;  %v74_v40 = vld [vmem:[%s1005_s1 + $0xe8] sm:$0xff]  ;;  %v632_v41 = vpack.c.bf16 %v73_v36, %v70_v35  ;;  %v76_v44 = vld [vmem:[%s1005_s1 + $0xf8] sm:$0xff]  ;;  %v79_v45 = vld [vmem:[%s1005_s1 + $0x110] sm:$0xff]  ;;  %v634_v48 = vpack.c.bf16 %v72_v43, %v69_v42 }
  0x1d   :  { %657 = vmatprep.subr.bf16.mxu1 %v656_v28  ;;  %v664_v46 = vpack.c.bf16 %v74_v40, %v71_v39  ;;  %v918_v47 = vld [vmem:[%s1004_s0] sm:$0xff]  ;;  %v80_v50 = vld [vmem:[%s1005_s1 + $0x118] sm:$0xff]  ;;  %v636_v52 = vpack.c.bf16 %v79_v45, %v76_v44  ;;  %v75_v53 = vld [vmem:[%s1005_s1 + $0xf0] sm:$0xff] }
  0x1e   :  { %627 = vmatpush1.bf16.msra.mxu0 %v626_v29  ;;  %v77_v49 = vld [vmem:[%s1005_s1 + $0x100] sm:$0xff]  ;;  %v43_v51 = vmax.f32 %v918_v47, 0.0  ;;  %v78_v54 = vld [vmem:[%s1005_s1 + $0x108] sm:$0xff]  ;;  %v83_v59 = vld [vmem:[%s1005_s1 + $0x130] sm:$0xff] }
  0x1f   :  { %629 = vmatprep.subr.bf16.mxu0 %v628_v32  ;;  %v82_v55 = vld [vmem:[%s1005_s1 + $0x128] sm:$0xff]  ;;  %v85_v56 = vld [vmem:[%s1005_s1 + $0x140] sm:$0xff]  ;;  %v668_v57 = vpack.c.bf16 %v80_v50, %v77_v49  ;;  %v638_v58 = vpack.c.bf16 %v78_v54, %v75_v53  ;;  %v84_v63 = vld [vmem:[%s1005_s1 + $0x138] sm:$0xff] }
  0x20   :  { %659 = vmatpush3.bf16.msra.mxu1 %v656_v28  ;;  %578 = vmatprep.mubr.f32.mxu1 %v43_v51  ;;  %v86_v60 = vld [vmem:[%s1005_s1 + $0x148] sm:$0xff]  ;;  %v640_v61 = vpack.c.bf16 %v85_v56, %v82_v55  ;;  %v81_v62 = vld [vmem:[%s1005_s1 + $0x120] sm:$0xff]  ;;  %v88_v1 = vld [vmem:[%s1005_s1 + $0x158] sm:$0xff] }
  0x21   :  { %661 = vmatprep.subr.bf16.mxu1 %v660_v37  ;;  %v91_v2 = vld [vmem:[%s1005_s1 + $0x170] sm:$0xff]  ;;  %v672_v3 = vpack.c.bf16 %v86_v60, %v83_v59  ;;  %v642_v4 = vpack.c.bf16 %v84_v63, %v81_v62  ;;  %v89_v5 = vld [vmem:[%s1005_s1 + $0x160] sm:$0xff]  ;;  %v92_v6 = vld [vmem:[%s1005_s1 + $0x178] sm:$0xff] }
  0x22   :  { %631 = vmatpush1.bf16.msra.mxu0 %v630_v38  ;;  %v644_v7 = vpack.c.bf16 %v91_v2, %v88_v1  ;;  %v87_v8 = vld [vmem:[%s1005_s1 + $0x150] sm:$0xff]  ;;  %v90_v9 = vld [vmem:[%s1005_s1 + $0x168] sm:$0xff]  ;;  %v278_v11 = vld [vmem:[#allocation2 + $0x20] sm:$0xff]  ;;  %v676_v12 = vpack.c.bf16 %v92_v6, %v89_v5 }
  0x23   :  { %633 = vmatprep.subr.bf16.mxu0 %v632_v41  ;;  %v275_v10 = vld [vmem:[#allocation2 + $0x8] sm:$0xff]  ;;  %v646_v13 = vpack.c.bf16 %v90_v9, %v87_v8  ;;  %v276_v14 = vld [vmem:[#allocation2 + $0x10] sm:$0xff]  ;;  %v274_v17 = vld [vmem:[#allocation2] sm:$0xff] }
  0x24   :  { %663 = vmatpush3.bf16.msra.mxu1 %v660_v37  ;;  %v279_v15 = vld [vmem:[#allocation2 + $0x28] sm:$0xff]  ;;  %v680_v16 = vpack.c.bf16 %v278_v11, %v275_v10  ;;  %v277_v18 = vld [vmem:[#allocation2 + $0x18] sm:$0xff]  ;;  %v284_v21 = vld [vmem:[#allocation2 + $0x50] sm:$0xff] }
  0x25   :  { %665 = vmatprep.subr.bf16.mxu1 %v664_v46  ;;  %v972_v19 = vld [vmem:[%s1004_s0 + $0x8] sm:$0xff]  ;;  %v281_v20 = vld [vmem:[#allocation2 + $0x38] sm:$0xff]  ;;  %v712_v22 = vpack.c.bf16 %v279_v15, %v276_v14  ;;  %v682_v23 = vpack.c.bf16 %v277_v18, %v274_v17  ;;  %v282_v24 = vld [vmem:[#allocation2 + $0x40] sm:$0xff] }
  0x26   :  { %635 = vmatpush1.bf16.msra.mxu0 %v634_v48  ;;  %v285_v25 = vld [vmem:[#allocation2 + $0x58] sm:$0xff]  ;;  %v44_v26 = vmax.f32 %v972_v19, 0.0  ;;  %v684_v27 = vpack.c.bf16 %v284_v21, %v281_v20  ;;  %v280_v28 = vld [vmem:[#allocation2 + $0x30] sm:$0xff]  ;;  %v283_v29 = vld [vmem:[#allocation2 + $0x48] sm:$0xff] }
  0x27   :  { %637 = vmatprep.subr.bf16.mxu0 %v636_v52  ;;  %v287_v30 = vld [vmem:[#allocation2 + $0x68] sm:$0xff]  ;;  %v290_v31 = vld [vmem:[#allocation2 + $0x80] sm:$0xff]  ;;  %v716_v32 = vpack.c.bf16 %v285_v25, %v282_v24  ;;  %v686_v33 = vpack.c.bf16 %v283_v29, %v280_v28  ;;  %v288_v34 = vld [vmem:[#allocation2 + $0x70] sm:$0xff]  ;;  %v34_v25 = vlaneseq }
  0x28   :  { %667 = vmatpush3.bf16.msra.mxu1 %v664_v46  ;;  %v291_v35 = vld [vmem:[#allocation2 + $0x88] sm:$0xff]  ;;  %v688_v36 = vpack.c.bf16 %v290_v31, %v287_v30  ;;  %v286_v37 = vld [vmem:[#allocation2 + $0x60] sm:$0xff]  ;;  %v289_v38 = vld [vmem:[#allocation2 + $0x78] sm:$0xff] }
  0x29   :  { %669 = vmatprep.subr.bf16.mxu1 %v668_v57  ;;  %v293_v39 = vld [vmem:[#allocation2 + $0x98] sm:$0xff]  ;;  %v296_v40 = vld [vmem:[#allocation2 + $0xb0] sm:$0xff]  ;;  %v720_v41 = vpack.c.bf16 %v291_v35, %v288_v34  ;;  %v690_v42 = vpack.c.bf16 %v289_v38, %v286_v37  ;;  %v294_v43 = vld [vmem:[#allocation2 + $0xa0] sm:$0xff] }
  0x2a   :  { %639 = vmatpush1.bf16.msra.mxu0 %v638_v58  ;;  %v297_v44 = vld [vmem:[#allocation2 + $0xb8] sm:$0xff]  ;;  %v692_v45 = vpack.c.bf16 %v296_v40, %v293_v39  ;;  %v292_v46 = vld [vmem:[#allocation2 + $0x90] sm:$0xff]  ;;  %v295_v48 = vld [vmem:[#allocation2 + $0xa8] sm:$0xff] }
  0x2b   :  { %641 = vmatprep.subr.bf16.mxu0 %v640_v61  ;;  %v724_v49 = vpack.c.bf16 %v297_v44, %v294_v43  ;;  %v694_v50 = vpack.c.bf16 %v295_v48, %v292_v46  ;;  %v302_v52 = vld [vmem:[#allocation2 + $0xe0] sm:$0xff]  ;;  %v301_v55 = vld [vmem:[#allocation2 + $0xd8] sm:$0xff]  ;;  %v300_v56 = vld [vmem:[#allocation2 + $0xd0] sm:$0xff] }
  0x2c   :  { %671 = vmatpush3.bf16.msra.mxu1 %v668_v57  ;;  %v298_v54 = vld [vmem:[#allocation2 + $0xc0] sm:$0xff]  ;;  %v303_v58 = vld [vmem:[#allocation2 + $0xe8] sm:$0xff]  ;;  %v305_v60 = vld [vmem:[#allocation2 + $0xf8] sm:$0xff] }
  0x2d   :  { %673 = vmatprep.subr.bf16.mxu1 %v672_v3  ;;  %v698_v57 = vpack.c.bf16 %v301_v55, %v298_v54  ;;  %v728_v59 = vpack.c.bf16 %v303_v58, %v300_v56  ;;  %v308_v61 = vld [vmem:[#allocation2 + $0x110] sm:$0xff]  ;;  %v307_v1 = vld [vmem:[#allocation2 + $0x108] sm:$0xff]  ;;  %v306_v2 = vld [vmem:[#allocation2 + $0x100] sm:$0xff] }
  0x2e   :  { %643 = vmatpush1.bf16.msra.mxu0 %v642_v4  ;;  %v700_v62 = vpack.c.bf16 %v308_v61, %v305_v60  ;;  %v304_v63 = vld [vmem:[#allocation2 + $0xf0] sm:$0xff]  ;;  %v309_v4 = vld [vmem:[#allocation2 + $0x118] sm:$0xff]  ;;  %v311_v6 = vld [vmem:[#allocation2 + $0x128] sm:$0xff] }
  0x2f   :  { %645 = vmatprep.subr.bf16.mxu0 %v644_v7  ;;  %v732_v5 = vpack.c.bf16 %v309_v4, %v306_v2  ;;  %v314_v7 = vld [vmem:[#allocation2 + $0x140] sm:$0xff]  ;;  %v313_v10 = vld [vmem:[#allocation2 + $0x138] sm:$0xff]  ;;  %v312_v11 = vld [vmem:[#allocation2 + $0x130] sm:$0xff] }
  0x30   :  { %675 = vmatpush3.bf16.msra.mxu1 %v672_v3  ;;  %v702_v3 = vpack.c.bf16 %v307_v1, %v304_v63  ;;  %v704_v8 = vpack.c.bf16 %v314_v7, %v311_v6  ;;  %v310_v9 = vld [vmem:[#allocation2 + $0x120] sm:$0xff]  ;;  %v317_v15 = vld [vmem:[#allocation2 + $0x158] sm:$0xff]  ;;  %v316_v18 = vld [vmem:[#allocation2 + $0x150] sm:$0xff] }
  0x31   :  { %677 = vmatprep.subr.bf16.mxu1 %v676_v12  ;;  %v319_v20 = vld [vmem:[#allocation2 + $0x168] sm:$0xff]  ;;  %v508_v46 = vld [vmem:[%s1006_s2] ss:$0 sm:$0xff] }
  0x32   :  { %647 = vmatpush1.bf16.msra.mxu0 %v646_v13  ;;  %v315_v13 = vld [vmem:[#allocation2 + $0x148] sm:$0xff]  ;;  %v710_v21 = vpack.c.bf16 %v319_v20, %v316_v18 }
  0x33   :  { %681 = vmatprep.subr.bf16.mxu0 %v680_v16  ;;  %v736_v14 = vpack.c.bf16 %v315_v13, %v312_v11  ;;  %v320_v16 = vld [vmem:[#allocation2 + $0x170] sm:$0xff] }
  0x34   :  { %679 = vmatpush3.bf16.msra.mxu1 %v676_v12  ;;  %v706_v12 = vpack.c.bf16 %v313_v10, %v310_v9  ;;  %v708_v17 = vpack.c.bf16 %v320_v16, %v317_v15 }
  0x35   :  { %158 = vmatmul.mubr.f32.vlgmr.msra.gmra.mrb[0].mxu0 %v43_v51  ;;  %713 = vmatprep.subr.bf16.mxu1 %v712_v22  ;;  %v299_v51 = vld [vmem:[#allocation2 + $0xc8] sm:$0xff] }
  0x36   :  { %163 = vmatprep.mubr.f32.mxu0 %v775_v0  ;;  %683 = vmatpush1.bf16.msra.mxu0 %v682_v23  ;;  %v696_v53 = vpack.c.bf16 %v302_v52, %v299_v51  ;;  %v321_v23 = vld [vmem:[#allocation2 + $0x178] sm:$0xff] }
  0x37   :  { %579 = vmatmul.mubr.f32.vlgmr.msra.gmra.mrb[0].mxu1 %v44_v26  ;;  %685 = vmatprep.subr.bf16.mxu0 %v684_v27 }
  0x38   :  { %715 = vmatpush3.bf16.msra.mxu1 %v712_v22  ;;  %v318_v22 = vld [vmem:[#allocation2 + $0x160] sm:$0xff] }
  0x39   :  { %164 = vmatmul.mubr.f32.gmra.mrb[2].mxu0 %v44_v26  ;;  %717 = vmatprep.subr.bf16.mxu1 %v716_v32  ;;  %v740_v24 = vpack.c.bf16 %v321_v23, %v318_v22  ;;  %v35_v26 = vshrl.u32 %v34_v25, 7 }
  0x3a   :  { %687 = vmatpush1.bf16.msra.mxu0 %v686_v33  ;;  %386 = vmatprep.mubr.f32.mxu0 %v775_v0 }
  0x3b   :  { %689 = vmatprep.subr.bf16.mxu0 %v688_v36  ;;  %v36_v28 = vadd.s32 8, %v35_v26  ;;  %vm252_vm0 = vcmp.lt.s32.totalorder %v35_v26, 7  ;;  %vm247_vm1 = vcmp.lt.s32.totalorder %v35_v26, 1  ;;  %vm37_vm3 = vcmp.ge.s32.totalorder %v35_v26, 1 }
  0x3c   :  { %719 = vmatpush3.bf16.msra.mxu1 %v716_v32 }
  0x3d   :  { %721 = vmatprep.subr.bf16.mxu1 %v720_v41  ;;  %vm40_vm2 = vcmp.le.s32.totalorder %v36_v28, 14 }
  0x3e   :  { %691 = vmatpush1.bf16.msra.mxu0 %v690_v42 }
  0x3f   :  { %693 = vmatprep.subr.bf16.mxu0 %v692_v45 }
  0x40   :  { %723 = vmatpush3.bf16.msra.mxu1 %v720_v41 }
  0x41   :  { %725 = vmatprep.subr.bf16.mxu1 %v724_v49 }
  0x42   :  { %695 = vmatpush1.bf16.msra.mxu0 %v694_v50 }
  0x43   :  { %697 = vmatprep.subr.bf16.mxu0 %v696_v53 }
  0x44   :  { %727 = vmatpush3.bf16.msra.mxu1 %v724_v49 }
  0x45   :  { %729 = vmatprep.subr.bf16.mxu1 %v728_v59 }
  0x46   :  { %699 = vmatpush1.bf16.msra.mxu0 %v698_v57 }
  0x47   :  { %701 = vmatprep.subr.bf16.mxu0 %v700_v62 }
  0x48   :  { %731 = vmatpush3.bf16.msra.mxu1 %v728_v59 }
  0x49   :  { %733 = vmatprep.subr.bf16.mxu1 %v732_v5 }
  0x4a   :  { %703 = vmatpush1.bf16.msra.mxu0 %v702_v3 }
  0x4b   :  { %705 = vmatprep.subr.bf16.mxu0 %v704_v8  ;;  %v509_v8 = vld [vmem:[%s1008_s4] ss:$0 sm:$0xff] }
  0x4c   :  { %735 = vmatpush3.bf16.msra.mxu1 %v732_v5 }
  0x4d   :  { %737 = vmatprep.subr.bf16.mxu1 %v736_v14 }
  0x4e   :  { %707 = vmatpush1.bf16.msra.mxu0 %v706_v12 }
  0x4f   :  { %709 = vmatprep.subr.bf16.mxu0 %v708_v17 }
  0x50   :  { %739 = vmatpush3.bf16.msra.mxu1 %v736_v14 }
  0x51   :  { %741 = vmatprep.subr.bf16.mxu1 %v740_v24 }
  0x52   :  { %711 = vmatpush1.bf16.msra.mxu0 %v710_v21 }
  0x54   :  { %743 = vmatpush3.bf16.msra.mxu1 %v740_v24 }
 0x108   :  { %v159_v27 = vpop.f32.mrb[0].mxu0 }
 0x109   :  { %v161_v29 = vpop.f32.mrb[1].mxu0  ;;  %v245_v35 = vrot.slane %v159_v27, 7 }
 0x10a   :  { %v580_v30 = vpop.f32.mrb[0].mxu1 }
 0x10b   :  { %v251_v31 = vrot.slane %v580_v30, 1  ;;  %v236_v32 = vpop.f32.mrb[1].mxu1 }
 0x10c   :  { %v165_v33 = vpop.f32.mrb[2].mxu0  ;;  %v250_v34 = vrot.slane %v236_v32, 1 }
 0x10d   :  { %v246_v36 = vrot.slane %v165_v33, 7  ;;  %v167_v37 = vpop.f32.mrb[3].mxu0 }
 0x10e   :  { %v253_v38 = vsel %vm252_vm0, %v250_v34, %v251_v31  ;;  %v254_v39 = vsel %vm252_vm0, %v251_v31, %v250_v34 }
 0x10f   :  { %v249_v40 = vsel %vm247_vm1, %v246_v36, %v245_v35  ;;  %v248_v41 = vsel %vm247_vm1, %v245_v35, %v246_v36  ;;  %v260_v42 = vsel %vm40_vm2, %v254_v39, 0.0 }
 0x110   :  { %v255_v43 = vsel %vm37_vm3, %v249_v40, 0.0  ;;  %v258_v44 = vadd.f32 %v248_v41, %v167_v37 }
 0x111   :  { %v257_v45 = vadd.f32 %v255_v43, %v161_v29 }
 0x112   :  { %v262_v48 = vadd.f32 %v260_v42, %v258_v44 }
 0x113   :  { %v261_v49 = vadd.f32 %v257_v45, %v253_v38 }
 0x114   :  { %v271_v50 = vadd.f32 %v508_v46, %v262_v48 }
 0x115   :  { %v270_v51 = vadd.f32 %v508_v46, %v261_v49 }
 0x116   :  { %v273_v53 = vmax.f32 %v271_v50, 0.0 }
 0x117   :  { %v272_v52 = vmax.f32 %v270_v51, 0.0 }
 0x119   :  { %387 = vmatmul.mubr.f32.vlgmr.msra.gmra.mrb[4].mxu0 %v272_v52  ;;  %613 = vmatprep.mubr.f32.mxu1 %v272_v52 }
 0x11a   :  { %614 = vmatmul.mubr.f32.vlgmr.msra.gmra.mrb[2].mxu1 %v273_v53  ;;  %392 = vmatprep.mubr.f32.mxu0 %v775_v0 }
 0x11d   :  { %393 = vmatmul.mubr.f32.gmra.mrb[6].mxu0 %v273_v53 }
 0x1ec   :  { %v388_v54 = vpop.f32.mrb[4].mxu0 }
 0x1ed   :  { %v390_v55 = vpop.f32.mrb[5].mxu0  ;;  %v615_v56 = vpop.f32.mrb[2].mxu1  ;;  %v474_v61 = vrot.slane %v388_v54, 7 }
 0x1ee   :  { %v479_v57 = vrot.slane %v615_v56, 1  ;;  %v465_v58 = vpop.f32.mrb[3].mxu1 }
 0x1ef   :  { %v478_v59 = vrot.slane %v465_v58, 1 }
 0x1f0   :  { %v394_v60 = vpop.f32.mrb[6].mxu0 }
 0x1f1   :  { %v480_v62 = vsel %vm252_vm0, %v478_v59, %v479_v57  ;;  %v481_v63 = vsel %vm252_vm0, %v479_v57, %v478_v59  ;;  %v475_v1 = vrot.slane %v394_v60, 7  ;;  %v396_v2 = vpop.f32.mrb[7].mxu0 }
 0x1f2   :  { %v487_v7 = vsel %vm40_vm2, %v481_v63, 0.0 }
 0x1f3   :  { %v477_v3 = vsel %vm247_vm1, %v475_v1, %v474_v61  ;;  %v476_v4 = vsel %vm247_vm1, %v474_v61, %v475_v1 }
 0x1f4   :  { %v482_v0 = vsel %vm37_vm3, %v477_v3, 0.0  ;;  %v485_v5 = vadd.f32 %v476_v4, %v396_v2 }
 0x1f5   :  { %v484_v6 = vadd.f32 %v482_v0, %v390_v55 }
 0x1f6   :  { %v489_v9 = vadd.f32 %v487_v7, %v485_v5 }
 0x1f7   :  { %v488_v10 = vadd.f32 %v484_v6, %v480_v62 }
 0x1f8   :  { %v498_v11 = vadd.f32 %v509_v8, %v489_v9 }
 0x1f9   :  { %v497_v12 = vadd.f32 %v509_v8, %v488_v10 }
 0x1fa   :  { %v500_v13 = vadd.f32 %v498_v11, %v972_v19 }
 0x1fb   :  { %v499_v14 = vadd.f32 %v497_v12, %v918_v47 }
 0x1fc   :  { %502 = vst [vmem:[%s1009_s5 + $0x8] sm:$0xff] %v500_v13 }
 0x1fd   :  { %501 = vst [vmem:[%s1009_s5] sm:$0xff] %v499_v14 }
 0x1fe   :  { %507 = vsyncpa [#allocation3], 1 }

</bundles_post_ra>
